<compile_context>
chip_gen: v6e
topology: v6e:2x2x1
jax: 0.10.0
libtpu: 0.0.40
codegen_flags: <defaults>
</compile_context>

<pallas_src>
import jax
import jax.numpy as jnp
from jax.experimental import pallas as pl
from jax.experimental.pallas import tpu as pltpu


def _round_up(v, m):
    return ((v + m - 1) // m) * m


def _vmem_capacity_bytes():
    try:
        return int(pltpu.get_tpu_info().vmem_capacity_bytes)
    except Exception:
        return 64 << 20  # conservative: v7x per-TensorCore VMEM


def _linear_kernel_fused_out(x_ref, w_ref, b_ref, o_ref):
    """y = x @ W^T + b, accumulating directly into the resident f32 output tile.

    The output BlockSpec ignores the k grid axis, so o_ref stays resident in
    VMEM across all k steps and is written back to HBM exactly once.
    """
    k = pl.program_id(2)

    @pl.when(k == 0)
    def _():
        o_ref[...] = jnp.broadcast_to(b_ref[...].astype(jnp.float32), o_ref.shape)

    # Contract x (tm, tk) against the untransposed nn.Linear weight (tn, tk) on
    # their last dims -> (tm, tn). MXU consumes the transposed RHS natively, so
    # no wrapper-side weight transpose (saves a full HBM round trip per call).
    # TODO(synk): if the lowered bundle ever shows a per-tile vxpose for the
    # RHS, pre-transpose the weight once outside the layer instead.
    o_ref[...] += jax.lax.dot_general(
        x_ref[...], w_ref[...],
        dimension_numbers=(((1,), (1,)), ((), ())),
        preferred_element_type=jnp.float32)


def _linear_kernel_scratch_acc(x_ref, w_ref, b_ref, o_ref, acc_ref):
    """Same computation, but with a separate f32 accumulator for narrow outputs."""
    k = pl.program_id(2)

    @pl.when(k == 0)
    def _():
        acc_ref[...] = jnp.zeros_like(acc_ref)

    acc_ref[...] += jax.lax.dot_general(
        x_ref[...], w_ref[...],
        dimension_numbers=(((1,), (1,)), ((), ())),
        preferred_element_type=jnp.float32)

    @pl.when(k == pl.num_programs(2) - 1)
    def _():
        o_ref[...] = (acc_ref[...] + b_ref[...].astype(jnp.float32)).astype(o_ref.dtype)


def multiple_linear_regression(x, weight, bias, *, tm=None, tn=None, tk=None,
                               compute_dtype=None):
    """Forward pass of torch.nn.Linear: x @ weight.T + bias.

    x: (B, D_in), weight: (D_out, D_in), bias: (D_out,).
    compute_dtype: optionally cast x/weight (e.g. to bf16) while keeping the
    f32 MXU accumulation and the original output dtype.
    """
    B, D_in = x.shape
    D_out, D_in_w = weight.shape
    assert D_in_w == D_in and bias.shape == (D_out,)

    out_dtype = x.dtype  # nn.Linear output dtype (before any compute cast)
    if compute_dtype is not None:
        x = x.astype(compute_dtype)
        weight = weight.astype(compute_dtype)

    in_dsize = jnp.dtype(x.dtype).itemsize
    out_dsize = jnp.dtype(out_dtype).itemsize
    fuse_acc_into_out = (out_dtype == jnp.float32)

    # ---- generation-aware tile selection ----------------------------------
    vmem_cap = _vmem_capacity_bytes()
    budget = int(vmem_cap * 0.40)          # double-buffered tile footprint budget
    vmem_limit = int(min(vmem_cap, 128 << 20) * 3 // 4)

    # N is zero-padded only when D_out is not a lane multiple (lane-dense stores).
    Np = D_out if D_out % 128 == 0 else _round_up(D_out, 128)
    Kp_base = _round_up(D_in, 128)

    # Targets: 256-multiples feed the 256x256 MXU (v6e/v7x); large K amortizes
    # per-step overhead and accumulator traffic. Clipped to the (padded) problem.
    if tm is None:
        tm = min(512, _round_up(B, 8))
    if tn is None:
        tn = min(512, Np)
    if tk is None:
        tk_target = min(2048, Kp_base)
        nk = pl.cdiv(Kp_base, tk_target)
        tk = _round_up(pl.cdiv(Kp_base, nk), 128)   # balanced -> minimal K over-pad

    def footprint(tm_, tn_, tk_):
        fp = 2 * (tm_ * tk_ + tn_ * tk_ + tn_) * in_dsize   # x, w, bias (dbl-buffered)
        fp += 2 * tm_ * tn_ * out_dsize                      # output tile (dbl-buffered)
        if not fuse_acc_into_out:
            fp += tm_ * tn_ * 4                              # f32 accumulator scratch
        return fp

    # Shrink (K first, then M, then N) until the footprint fits the VMEM budget.
    while footprint(tm, tn, tk) > budget and tk > 512:
        tk = max(512, _round_up(tk // 2, 128))
    while footprint(tm, tn, tk) > budget and tm > 256:
        tm = max(256, _round_up(tm // 2, 8))
    while footprint(tm, tn, tk) > budget and tn > 256:
        tn = max(256, _round_up(tn // 2, 128))
    while footprint(tm, tn, tk) > budget and tk > 128:
        tk = max(128, _round_up(tk // 2, 128))

    grid_m = pl.cdiv(B, tm)
    grid_n = pl.cdiv(Np, tn)
    # v7x has 2 TensorCores: make sure the parallel (M, N) axes have >= 2 tiles
    # to shard when the problem allows it.
    if grid_m * grid_n == 1 and B >= 16:
        tm = _round_up(pl.cdiv(B, 2), 8)
        grid_m = pl.cdiv(B, tm)

    Kp = _round_up(D_in, tk)
    grid_k = Kp // tk

    # ---- padding: K must be zero-padded (correctness of the accumulation),
    # N only to reach a 128 lane multiple; M is never padded (edge blocks of
    # the output are simply discarded by Pallas).
    xp = x if Kp == D_in else jnp.pad(x, ((0, 0), (0, Kp - D_in)))
    if Kp == D_in and Np == D_out:
        wp = weight
    else:
        wp = jnp.pad(weight, ((0, Np - D_out), (0, Kp - D_in)))
    bp = bias if Np == D_out else jnp.pad(bias, (0, Np - D_out))
    b2 = bp.reshape(1, Np)

    if fuse_acc_into_out:
        kernel = _linear_kernel_fused_out
        scratch = []
    else:
        kernel = _linear_kernel_scratch_acc
        scratch = [pltpu.VMEM((tm, tn), jnp.float32)]

    bias_dsize = jnp.dtype(bp.dtype).itemsize
    bytes_accessed = (grid_n * B * Kp * in_dsize          # x re-read per N tile
                      + grid_m * Np * Kp * in_dsize        # weight re-read per M tile
                      + grid_m * Np * bias_dsize           # bias re-reads
                      + B * Np * out_dsize)                # single output writeback

    out = pl.pallas_call(
        kernel,
        out_shape=jax.ShapeDtypeStruct((B, Np), out_dtype),
        grid_spec=pltpu.PrefetchScalarGridSpec(
            num_scalar_prefetch=0,
            grid=(grid_m, grid_n, grid_k),
            in_specs=[
                pl.BlockSpec((tm, tk), lambda i, j, k: (i, k)),   # x
                pl.BlockSpec((tn, tk), lambda i, j, k: (j, k)),   # weight (N, K)
                pl.BlockSpec((1, tn), lambda i, j, k: (0, j)),    # bias
            ],
            out_specs=pl.BlockSpec((tm, tn), lambda i, j, k: (i, j)),
            scratch_shapes=scratch,
        ),
        compiler_params=pltpu.CompilerParams(
            dimension_semantics=("parallel", "parallel", "arbitrary"),
            vmem_limit_bytes=vmem_limit),
        cost_estimate=pl.CostEstimate(
            flops=2 * B * Np * Kp,
            transcendentals=0,
            bytes_accessed=int(bytes_accessed)),
    )(xp, wp, b2)

    if Np != D_out:
        out = out[:, :D_out]
    return out


if __name__ == "__main__":
    key = jax.random.PRNGKey(0)
    kx, kw, kb = jax.random.split(key, 3)

    batch = 8
    input_dim = 32
    output_dim = 16

    # Deterministic parameter init mimicking torch.nn.Linear default:
    # U(-1/sqrt(in_features), 1/sqrt(in_features))
    bound = 1.0 / (input_dim ** 0.5)
    weight = jax.random.uniform(kw, (output_dim, input_dim),
                                minval=-bound, maxval=bound,
                                dtype=jnp.float32)
    bias = jax.random.uniform(kb, (output_dim,),
                              minval=-bound, maxval=bound,
                              dtype=jnp.float32)

    x = jax.random.normal(kx, (batch, input_dim), dtype=jnp.float32)

    # NOTE: at 8x32x16 this op is launch-latency bound; the Pallas path is
    # exercised here for correctness, the tiling pays off at real shapes.
    y = multiple_linear_regression(x, weight, bias)
    y = jax.block_until_ready(y)

    # Reference check against plain JAX.
    y_ref = x @ weight.T + bias
    assert y.shape == (batch, output_dim)
    assert jnp.allclose(y, y_ref, atol=1e-5, rtol=1e-5)

    print("KERNEL_OK")
</pallas_src>

<mosaic_0001>
module attributes {stable_mosaic.version = 11 : i64} {
  func.func @_linear_kernel_fused_out(%arg0: i32, %arg1: i32, %arg2: i32, %arg3: memref<8x128xf32, #tpu.memory_space<vmem>>, %arg4: memref<128x128xf32, #tpu.memory_space<vmem>>, %arg5: memref<1x128xf32, #tpu.memory_space<vmem>>, %arg6: memref<8x128xf32, #tpu.memory_space<vmem>>) attributes {dimension_semantics = [#tpu.dimension_semantics<parallel>, #tpu.dimension_semantics<parallel>, #tpu.dimension_semantics<arbitrary>], iteration_bounds = array<i64: 1, 1, 1>, scalar_prefetch = 0 : i64, scratch_operands = 0 : i64, tpu.core_type = #tpu.core_type<tc>, window_params = [{transform_indices = @transform_0, window_bounds = array<i64: 8, 128>}, {transform_indices = @transform_1, window_bounds = array<i64: 128, 128>}, {transform_indices = @transform_2, window_bounds = array<i64: 1, 128>}, {transform_indices = @transform_3, window_bounds = array<i64: 8, 128>}]} {
    %c0_i32 = arith.constant 0 : i32
    %0 = arith.cmpi eq, %arg2, %c0_i32 : i32
    %1 = arith.extui %0 : i1 to i32
    %c0_i32_0 = arith.constant 0 : i32
    %2 = arith.cmpi ne, %1, %c0_i32_0 : i32
    scf.if %2 {
      %c0_8 = arith.constant 0 : index
      %c0_9 = arith.constant 0 : index
      %9 = vector.load %arg5[%c0_8, %c0_9] : memref<1x128xf32, #tpu.memory_space<vmem>>, vector<1x128xf32>
      %10 = vector.shape_cast %9 : vector<1x128xf32> to vector<1x128xf32>
      %11 = vector.broadcast %10 : vector<1x128xf32> to vector<8x128xf32>
      %c0_10 = arith.constant 0 : index
      %c0_11 = arith.constant 0 : index
      %12 = vector.load %arg6[%c0_10, %c0_11] : memref<8x128xf32, #tpu.memory_space<vmem>>, vector<8x128xf32>
      tpu.vector_store %arg6[%c0_10, %c0_11], %11 {strides = array<i32>} : memref<8x128xf32, #tpu.memory_space<vmem>>, vector<8x128xf32>,
    } else {
    }
    %c0 = arith.constant 0 : index
    %c0_1 = arith.constant 0 : index
    %3 = vector.load %arg6[%c0, %c0_1] : memref<8x128xf32, #tpu.memory_space<vmem>>, vector<8x128xf32>
    %c0_2 = arith.constant 0 : index
    %c0_3 = arith.constant 0 : index
    %4 = vector.load %arg3[%c0_2, %c0_3] : memref<8x128xf32, #tpu.memory_space<vmem>>, vector<8x128xf32>
    %c0_4 = arith.constant 0 : index
    %c0_5 = arith.constant 0 : index
    %5 = vector.load %arg4[%c0_4, %c0_5] : memref<128x128xf32, #tpu.memory_space<vmem>>, vector<128x128xf32>
    %cst = arith.constant dense<0.000000e+00> : vector<8x128xf32>
    %6 = tpu.matmul %4, %5, %cst {dimension_numbers = #tpu.dot_dimension_numbers<[1], [1], [0], [0], [0, 0, 1, 0], [], []>} : vector<8x128xf32>, vector<128x128xf32>, vector<8x128xf32> -> vector<8x128xf32>
    %7 = arith.addf %3, %6 : vector<8x128xf32>
    %c0_6 = arith.constant 0 : index
    %c0_7 = arith.constant 0 : index
    %8 = vector.load %arg6[%c0_6, %c0_7] : memref<8x128xf32, #tpu.memory_space<vmem>>, vector<8x128xf32>
    tpu.vector_store %arg6[%c0_6, %c0_7], %7 {strides = array<i32>} : memref<8x128xf32, #tpu.memory_space<vmem>>, vector<8x128xf32>,
    return
  }
  func.func @transform_0(%arg0: i32, %arg1: i32, %arg2: i32) -> (i32, i32) {
    %c0_i32 = arith.constant 0 : i32
    return %arg0, %arg2 : i32, i32
  }
  func.func @transform_1(%arg0: i32, %arg1: i32, %arg2: i32) -> (i32, i32) {
    %c0_i32 = arith.constant 0 : i32
    return %arg1, %arg2 : i32, i32
  }
  func.func @transform_2(%arg0: i32, %arg1: i32, %arg2: i32) -> (i32, i32) {
    %c0_i32 = arith.constant 0 : i32
    %c0_i32_0 = arith.constant 0 : i32
    return %c0_i32, %arg1 : i32, i32
  }
  func.func @transform_3(%arg0: i32, %arg1: i32, %arg2: i32) -> (i32, i32) {
    %c0_i32 = arith.constant 0 : i32
    return %arg0, %arg1 : i32, i32
  }
}

</mosaic_0001>

<bundles_post_ra>
// kernel: tpu_custom_call.1
= control target key start
LH: loop header
LB: loop body
LE: loop exit
PB: predicated region body
PF: predicated region fallthrough
CT: control target
= control target key end

     0   :  { %8 = vsyncpa [#allocation3], 0  ;;  %s324_s0 = inlined_call_operand.hbm [shape: f32[8,128], index: 0, kind: input, shape index: {}]   ;;  %s325_s1 = inlined_call_operand.hbm [shape: f32[128,128], index: 1, kind: input, shape index: {}]   ;;  %s326_s2 = inlined_call_operand.vmem [shape: f32[1,128], index: 2, kind: input, shape index: {}]   ;;  %s327_s3 = inlined_call_operand.hbm [shape: f32[8,128], index: 3, kind: output, shape index: {}]  }
   0x1   :  { %9 = vsyncpa [#allocation6], 0 }
   0x2   :  { %10 = vsyncpa [#allocation4], 0  ;;  %s285_s12 = smov [#allocation2]   ;;  %s286_s14 = smov [#allocation5]  }
   0x3   :  { %s17_s13 = sshll.u32 %s285_s12, 4  ;;  %s26_s15 = sshll.u32 %s286_s14, 4  ;;  %s18_s13 = int_to_ptr.vmem [resolvable:$true] %s17_s13  ;;  %s27_s15 = int_to_ptr.vmem [resolvable:$true] %s26_s15 }
   0x4   :  { %s227_s16 = scalar_lea.vmem %s18_s13, 128  ;;  %p232_p1 = scmp.lt.s32.totalorder %s18_s13, %s18_s13 }
   0x5   :  { %p228_p0 = scmp.ne.s32.totalorder %s18_s13, %s227_s16  ;;  %p233_p2 = scmp.lt.s32.totalorder %s227_s16, %s227_s16 }
   0x7   :  { %p234_p3 = por %p233_p2, %p232_p1 }
   0x9   :  { %p235_p4 = pnand %p234_p3, %p228_p0 }
   0xb   :  { %238 = shalt.err (!%p235_p4)
}
   0xc   :  { %20 = dma.hbm_to_vmem [thread:$0]  %s324_s0, 128, %s18_s13, [#allocation3]  }
   0xd   :  { %s247_s19 = scalar_lea.vmem %s27_s15, 2048  ;;  %p252_p6 = scmp.lt.s32.totalorder %s27_s15, %s27_s15 }
   0xe   :  { %p248_p5 = scmp.ne.s32.totalorder %s27_s15, %s247_s19  ;;  %p253_p7 = scmp.lt.s32.totalorder %s247_s19, %s247_s19 }
  0x10   :  { %p254_p8 = por %p253_p7, %p252_p6 }
  0x12   :  { %p255_p9 = pnand %p254_p8, %p248_p5 }
  0x14   :  { %258 = shalt.err (!%p255_p9)
}
  0x15   :  { %s287_s20 = smov 128   ;;  %s288_s21 = smov 8  }
  0x16   :  { %32 = dma.hbm_to_vmem [thread:$0]  %s325_s1, 2048, %s27_s15, [#allocation6], %s287_s20, %s287_s20, %s288_s21  }
  0x17   :  { %279 = dma.done.wait [#allocation3], 128  }
  0x18   :  { %280 = vsyncadd [#allocation3], 4294967168 }
  0x19   :  { %281 = dma.done.wait [#allocation6], 2048  }
  0x1a   :  { %282 = vsyncadd [#allocation6], 4294965248  ;;  %v289_v0 = vmov 0.0   ;;  %vm290_vm0 = vmmov 0   ;;  %v70_v1 = vld [vmem:[#allocation5 + $0x78] sm:$0xff]  ;;  %v69_v2 = vld [vmem:[#allocation5 + $0x70] sm:$0xff] }
  0x1b   :  { %177 = vmatprep.subr.mxu0 %v289_v0  ;;  %209 = vmatprep.mubr.msk.f32.mxu0 %vm290_vm0, %v289_v0  ;;  %v68_v3 = vld [vmem:[#allocation5 + $0x68] sm:$0xff]  ;;  %v67_v4 = vld [vmem:[#allocation5 + $0x60] sm:$0xff]  ;;  %v66_v5 = vld [vmem:[#allocation5 + $0x58] sm:$0xff]  ;;  %s291_s24 = smov [#allocation7]  }
  0x1c   :  { %178 = vmatpush3.xpose.msra.mxu0 %v70_v1  ;;  %v65_v6 = vld [vmem:[#allocation5 + $0x50] sm:$0xff]  ;;  %v64_v7 = vld [vmem:[#allocation5 + $0x48] sm:$0xff]  ;;  %v63_v8 = vld [vmem:[#allocation5 + $0x40] sm:$0xff]  ;;  %s149_s25 = sshll.u32 %s291_s24, 4  ;;  %s150_s25 = int_to_ptr.vmem [resolvable:$true] %s149_s25 }
  0x1d   :  { %179 = vmatprep.subr.mxu0 %v289_v0  ;;  %v62_v9 = vld [vmem:[#allocation5 + $0x38] sm:$0xff]  ;;  %v61_v10 = vld [vmem:[#allocation5 + $0x30] sm:$0xff]  ;;  %v60_v11 = vld [vmem:[#allocation5 + $0x28] sm:$0xff]  ;;  %s259_s26 = scalar_lea.vmem %s150_s25, 128  ;;  %p264_p11 = scmp.lt.s32.totalorder %s150_s25, %s150_s25 }
  0x1e   :  { %v59_v12 = vld [vmem:[#allocation5 + $0x20] sm:$0xff]  ;;  %v58_v13 = vld [vmem:[#allocation5 + $0x18] sm:$0xff]  ;;  %v57_v14 = vld [vmem:[#allocation5 + $0x10] sm:$0xff]  ;;  %p260_p10 = scmp.ne.s32.totalorder %s150_s25, %s259_s26  ;;  %p265_p12 = scmp.lt.s32.totalorder %s259_s26, %s259_s26 }
  0x1f   :  { %v56_v15 = vld [vmem:[#allocation5 + $0x8] sm:$0xff]  ;;  %v55_v16 = vld [vmem:[#allocation5] sm:$0xff]  ;;  %v54_v17 = vld [vmem:[#allocation2] sm:$0xff] }
  0x20   :  { %180 = vmatpush3.xpose.msra.mxu0 %v69_v2  ;;  %v159_v18 = vld [vmem:[%s326_s2] ss:$0 sm:$0xff]  ;;  %p266_p13 = por %p265_p12, %p264_p11 }
  0x21   :  { %181 = vmatprep.subr.mxu0 %v289_v0 }
  0x22   :  { %p267_p0 = pnand %p266_p13, %p260_p10 }
  0x24   :  { %182 = vmatpush3.xpose.msra.mxu0 %v68_v3 }
  0x25   :  { %183 = vmatprep.subr.mxu0 %v289_v0 }
  0x28   :  { %184 = vmatpush3.xpose.msra.mxu0 %v67_v4 }
  0x29   :  { %185 = vmatprep.subr.mxu0 %v289_v0 }
  0x2c   :  { %186 = vmatpush3.xpose.msra.mxu0 %v66_v5 }
  0x2d   :  { %187 = vmatprep.subr.mxu0 %v289_v0 }
  0x30   :  { %188 = vmatpush3.xpose.msra.mxu0 %v65_v6 }
  0x31   :  { %189 = vmatprep.subr.mxu0 %v289_v0 }
  0x34   :  { %190 = vmatpush3.xpose.msra.mxu0 %v64_v7 }
  0x35   :  { %191 = vmatprep.subr.mxu0 %v289_v0 }
  0x38   :  { %192 = vmatpush3.xpose.msra.mxu0 %v63_v8 }
  0x39   :  { %193 = vmatprep.subr.mxu0 %v289_v0 }
  0x3c   :  { %194 = vmatpush3.xpose.msra.mxu0 %v62_v9 }
  0x3d   :  { %195 = vmatprep.subr.mxu0 %v289_v0 }
  0x40   :  { %196 = vmatpush3.xpose.msra.mxu0 %v61_v10 }
  0x41   :  { %197 = vmatprep.subr.mxu0 %v289_v0 }
  0x44   :  { %198 = vmatpush3.xpose.msra.mxu0 %v60_v11 }
  0x45   :  { %199 = vmatprep.subr.mxu0 %v289_v0 }
  0x48   :  { %200 = vmatpush3.xpose.msra.mxu0 %v59_v12 }
  0x49   :  { %201 = vmatprep.subr.mxu0 %v289_v0 }
  0x4c   :  { %202 = vmatpush3.xpose.msra.mxu0 %v58_v13 }
  0x4d   :  { %203 = vmatprep.subr.mxu0 %v289_v0 }
  0x50   :  { %204 = vmatpush3.xpose.msra.mxu0 %v57_v14 }
  0x51   :  { %205 = vmatprep.subr.mxu0 %v289_v0 }
  0x54   :  { %206 = vmatpush3.xpose.msra.mxu0 %v56_v15 }
  0x55   :  { %207 = vmatprep.subr.mxu0 %v289_v0 }
  0x58   :  { %208 = vmatpush3.xpose.msra.mxu0 %v55_v16 }
  0x5b   :  { %210 = vmatmul.mubr.f32.vlgmr.msra.gmra.mxu0 %v54_v17 }
 0x11b   :  { %v137_v19 = vpop.f32.mrf.mxu0 }
 0x11c   :  { %v141_v20 = vadd.f32 %v159_v18, %v137_v19 }
 0x11d   :  { %v211_v21 = vpop.f32.mrf.mxu0 }
 0x11e   :  { %142 = vst [vmem:[#allocation7] sm:$0xff] %v141_v20 }
 0x11f   :  { %270 = shalt.err (!%p267_p0)
}
 0x120   :  { %152 = dma.vmem_to_hbm [thread:$0]  %s150_s25, 128, %s327_s3, [#allocation4]  }
 0x121   :  { %283 = dma.done.wait [#allocation4], 128  }
 0x122   :  { %284 = vsyncadd [#allocation4], 4294967168 }
 0x123   :  { %156 = vsyncpa [#allocation3], 1 }
 0x124   :  { %157 = vsyncpa [#allocation6], 1 }
 0x125   :  { %158 = vsyncpa [#allocation4], 1 }

</bundles_post_ra>
